<compile_context>
chip_gen: v5e
topology: v5e:2x2
jax: 0.10.0
libtpu: 0.0.40
codegen_flags: <defaults>
</compile_context>

<pallas_src>
import jax
import jax.numpy as jnp
from jax.experimental import pallas as pl
from jax.experimental.pallas import tpu as pltpu


def _se_kernel(x_ref, w1_ref, b1_ref, w2t_ref, b2t_ref, o_ref):
    # x_ref block: (1, C, HW); w1 (C,S); b1 (1,S); w2t (C,S); b2t (C,1)
    x = x_ref[0]                                            # (C, HW)
    xf = x.astype(jnp.float32)

    # AdaptiveAvgPool2d(1): mean over all spatial positions (lane-axis reduce).
    mean = jnp.mean(xf, axis=1, keepdims=True)              # (C, 1) f32

    # conv1 (1x1) + bias + ReLU, done on the VPU/XLU (M=1, S tiny -> skip MXU):
    #   h[s] = relu( sum_c mean[c] * w1[c, s] + b1[s] )
    h = jnp.sum(mean * w1_ref[...], axis=0, keepdims=True) + b1_ref[...]   # (1, S)
    h = jnp.maximum(h, 0.0)

    # conv2 (1x1) + bias + ReLU:
    #   s[c] = relu( sum_k h[k] * w2[k, c] + b2[c] )   (w2 passed transposed)
    s = jnp.sum(h * w2t_ref[...], axis=1, keepdims=True) + b2t_ref[...]    # (C, 1)
    s = jnp.maximum(s, 0.0)

    # scale_activation = Sigmoid (exp on the EUP slot), broadcast over lanes.
    scale = jax.nn.sigmoid(s)                               # (C, 1)
    o_ref[0] = (xf * scale).astype(o_ref.dtype)


def squeeze_excitation_pallas(x_nchw, w1, b1, w2, b2):
    """x_nchw: (N, C, H, W); w1:(C,S) b1:(1,S) w2:(S,C) b2:(1,C)."""
    N, C, H, W = x_nchw.shape
    S = w1.shape[1]
    HW = H * W

    # Free reshape: NCHW -> (N, C, HW). Spatial dim sits on the fast lane axis.
    x = x_nchw.reshape(N, C, HW)

    # Plumb the second conv's weights so the kernel's reduce is over the lane
    # axis: w2t[c, s] = w2[s, c], b2t[c, 0] = b2[0, c]. These are tiny.
    w2t = jnp.transpose(w2)                                  # (C, S)
    b2t = jnp.reshape(b2, (C, 1))                            # (C, 1)

    # Size scoped VMEM for the double-buffered (1, C, HW) input + output blocks.
    block_bytes = C * HW * x.dtype.itemsize
    vmem_limit = int(min(max(4 * block_bytes + (2 << 20), 32 << 20), 100 << 20))

    out = pl.pallas_call(
        _se_kernel,
        out_shape=jax.ShapeDtypeStruct((N, C, HW), x.dtype),
        grid_spec=pltpu.PrefetchScalarGridSpec(
            num_scalar_prefetch=0,
            grid=(N,),
            in_specs=[
                pl.BlockSpec((1, C, HW), lambda n: (n, 0, 0)),   # x, one batch per step
                pl.BlockSpec((C, S), lambda n: (0, 0)),          # w1 (resident)
                pl.BlockSpec((1, S), lambda n: (0, 0)),          # b1
                pl.BlockSpec((C, S), lambda n: (0, 0)),          # w2^T
                pl.BlockSpec((C, 1), lambda n: (0, 0)),          # b2^T
            ],
            out_specs=pl.BlockSpec((1, C, HW), lambda n: (n, 0, 0)),
        ),
        compiler_params=pltpu.CompilerParams(
            dimension_semantics=("parallel",),
            vmem_limit_bytes=vmem_limit,
        ),
    )(x, w1, b1, w2t, b2t)

    # Free reshape back to NCHW.
    return out.reshape(N, C, H, W)


def squeeze_excitation_ref(x_nchw, w1, b1, w2, b2):
    # Pure-JAX reference mirroring the PyTorch forward.
    mean = jnp.mean(x_nchw, axis=(2, 3))                      # (N, C)
    h = jnp.maximum(mean @ w1 + b1, 0.0)                      # (N, S)
    s = jnp.maximum(h @ w2 + b2, 0.0)                         # (N, C)
    scale = jax.nn.sigmoid(s)[:, :, None, None]               # (N, C, 1, 1)
    return scale * x_nchw


if __name__ == "__main__":
    N, C, H, W = 2, 4, 16, 16
    Sq = 2  # squeeze_channels

    key = jax.random.PRNGKey(0)
    kx, k1, kb1, k2, kb2 = jax.random.split(key, 5)

    x = jax.random.normal(kx, (N, C, H, W), dtype=jnp.float32)

    # Conv2d(C, Sq, 1, bias=True) weight (Sq, C, 1, 1) stored here as (C, Sq)
    # so that the 1x1 conv becomes `pooled @ w1 + b1` (and similarly for conv2).
    w1 = 0.3 * jax.random.normal(k1, (C, Sq), dtype=jnp.float32)
    b1 = 0.1 * jax.random.normal(kb1, (1, Sq), dtype=jnp.float32)
    w2 = 0.3 * jax.random.normal(k2, (Sq, C), dtype=jnp.float32)
    b2 = 0.1 * jax.random.normal(kb2, (1, C), dtype=jnp.float32)

    out = jax.block_until_ready(squeeze_excitation_pallas(x, w1, b1, w2, b2))
    ref = squeeze_excitation_ref(x, w1, b1, w2, b2)

    assert out.shape == (N, C, H, W)
    assert jnp.allclose(out, ref, atol=1e-5, rtol=1e-5)
    print("KERNEL_OK")
</pallas_src>

<mosaic_0001>
module attributes {stable_mosaic.version = 11 : i64} {
  func.func @_se_kernel(%arg0: i32, %arg1: memref<1x4x256xf32, #tpu.memory_space<vmem>>, %arg2: memref<4x2xf32, #tpu.memory_space<vmem>>, %arg3: memref<1x2xf32, #tpu.memory_space<vmem>>, %arg4: memref<4x2xf32, #tpu.memory_space<vmem>>, %arg5: memref<4x1xf32, #tpu.memory_space<vmem>>, %arg6: memref<1x4x256xf32, #tpu.memory_space<vmem>>) attributes {dimension_semantics = [#tpu.dimension_semantics<parallel>], iteration_bounds = array<i64: 2>, scalar_prefetch = 0 : i64, scratch_operands = 0 : i64, tpu.core_type = #tpu.core_type<tc>, window_params = [{transform_indices = @transform_0, window_bounds = array<i64: 1, 4, 256>}, {pipeline_mode = #tpu.pipeline_mode<synchronous>, transform_indices = @transform_1, window_bounds = array<i64: 4, 2>}, {pipeline_mode = #tpu.pipeline_mode<synchronous>, transform_indices = @transform_2, window_bounds = array<i64: 1, 2>}, {pipeline_mode = #tpu.pipeline_mode<synchronous>, transform_indices = @transform_3, window_bounds = array<i64: 4, 2>}, {pipeline_mode = #tpu.pipeline_mode<synchronous>, transform_indices = @transform_4, window_bounds = array<i64: 4, 1>}, {transform_indices = @transform_5, window_bounds = array<i64: 1, 4, 256>}]} {
    %c0 = arith.constant 0 : index
    %c0_0 = arith.constant 0 : index
    %c0_1 = arith.constant 0 : index
    %0 = vector.load %arg1[%c0, %c0_0, %c0_1] : memref<1x4x256xf32, #tpu.memory_space<vmem>>, vector<1x4x256xf32>
    %1 = vector.shape_cast %0 : vector<1x4x256xf32> to vector<4x256xf32>
    %cst = arith.constant dense<0.000000e+00> : vector<4xf32>
    %2 = vector.multi_reduction <add>, %1, %cst [1] : vector<4x256xf32> to vector<4xf32>
    %3 = vector.shape_cast %2 : vector<4xf32> to vector<4x1xf32>
    %cst_2 = arith.constant 2.560000e+02 : f32
    %4 = vector.broadcast %cst_2 : f32 to vector<4x1xf32>
    %5 = arith.divf %3, %4 : vector<4x1xf32>
    %c0_3 = arith.constant 0 : index
    %c0_4 = arith.constant 0 : index
    %6 = vector.load %arg2[%c0_3, %c0_4] : memref<4x2xf32, #tpu.memory_space<vmem>>, vector<4x2xf32>
    %7 = vector.broadcast %5 : vector<4x1xf32> to vector<4x2xf32>
    %8 = arith.mulf %7, %6 : vector<4x2xf32>
    %cst_5 = arith.constant dense<0.000000e+00> : vector<2xf32>
    %9 = vector.multi_reduction <add>, %8, %cst_5 [0] : vector<4x2xf32> to vector<2xf32>
    %10 = vector.shape_cast %9 : vector<2xf32> to vector<1x2xf32>
    %c0_6 = arith.constant 0 : index
    %c0_7 = arith.constant 0 : index
    %11 = vector.load %arg3[%c0_6, %c0_7] : memref<1x2xf32, #tpu.memory_space<vmem>>, vector<1x2xf32>
    %12 = arith.addf %10, %11 : vector<1x2xf32>
    %cst_8 = arith.constant 0.000000e+00 : f32
    %13 = vector.broadcast %cst_8 : f32 to vector<1x2xf32>
    %14 = arith.maximumf %12, %13 : vector<1x2xf32>
    %c0_9 = arith.constant 0 : index
    %c0_10 = arith.constant 0 : index
    %15 = vector.load %arg4[%c0_9, %c0_10] : memref<4x2xf32, #tpu.memory_space<vmem>>, vector<4x2xf32>
    %16 = vector.broadcast %14 : vector<1x2xf32> to vector<4x2xf32>
    %17 = arith.mulf %16, %15 : vector<4x2xf32>
    %cst_11 = arith.constant dense<0.000000e+00> : vector<4xf32>
    %18 = vector.multi_reduction <add>, %17, %cst_11 [1] : vector<4x2xf32> to vector<4xf32>
    %19 = vector.shape_cast %18 : vector<4xf32> to vector<4x1xf32>
    %c0_12 = arith.constant 0 : index
    %c0_13 = arith.constant 0 : index
    %20 = vector.load %arg5[%c0_12, %c0_13] : memref<4x1xf32, #tpu.memory_space<vmem>>, vector<4x1xf32>
    %21 = arith.addf %19, %20 : vector<4x1xf32>
    %cst_14 = arith.constant 0.000000e+00 : f32
    %22 = vector.broadcast %cst_14 : f32 to vector<4x1xf32>
    %23 = arith.maximumf %21, %22 : vector<4x1xf32>
    %24 = arith.negf %23 : vector<4x1xf32>
    %25 = math.exp %24 : vector<4x1xf32>
    %cst_15 = arith.constant 1.000000e+00 : f32
    %26 = vector.broadcast %cst_15 : f32 to vector<4x1xf32>
    %27 = arith.addf %26, %25 : vector<4x1xf32>
    %28 = arith.divf %26, %27 : vector<4x1xf32>
    %29 = vector.broadcast %28 : vector<4x1xf32> to vector<4x256xf32>
    %30 = arith.mulf %1, %29 : vector<4x256xf32>
    %c0_16 = arith.constant 0 : index
    %c0_17 = arith.constant 0 : index
    %c0_18 = arith.constant 0 : index
    %31 = vector.load %arg6[%c0_16, %c0_17, %c0_18] : memref<1x4x256xf32, #tpu.memory_space<vmem>>, vector<1x4x256xf32>
    %32 = vector.shape_cast %31 : vector<1x4x256xf32> to vector<4x256xf32>
    %33 = vector.shape_cast %30 : vector<4x256xf32> to vector<1x4x256xf32>
    tpu.vector_store %arg6[%c0_16, %c0_17, %c0_18], %33 {strides = array<i32>} : memref<1x4x256xf32, #tpu.memory_space<vmem>>, vector<1x4x256xf32>,
    return
  }
  func.func @transform_0(%arg0: i32) -> (i32, i32, i32) {
    %c0_i32 = arith.constant 0 : i32
    %c0_i32_0 = arith.constant 0 : i32
    %c0_i32_1 = arith.constant 0 : i32
    return %arg0, %c0_i32, %c0_i32_0 : i32, i32, i32
  }
  func.func @transform_1(%arg0: i32) -> (i32, i32) {
    %c0_i32 = arith.constant 0 : i32
    %c0_i32_0 = arith.constant 0 : i32
    %c0_i32_1 = arith.constant 0 : i32
    return %c0_i32, %c0_i32_0 : i32, i32
  }
  func.func @transform_2(%arg0: i32) -> (i32, i32) {
    %c0_i32 = arith.constant 0 : i32
    %c0_i32_0 = arith.constant 0 : i32
    %c0_i32_1 = arith.constant 0 : i32
    return %c0_i32, %c0_i32_0 : i32, i32
  }
  func.func @transform_3(%arg0: i32) -> (i32, i32) {
    %c0_i32 = arith.constant 0 : i32
    %c0_i32_0 = arith.constant 0 : i32
    %c0_i32_1 = arith.constant 0 : i32
    return %c0_i32, %c0_i32_0 : i32, i32
  }
  func.func @transform_4(%arg0: i32) -> (i32, i32) {
    %c0_i32 = arith.constant 0 : i32
    %c0_i32_0 = arith.constant 0 : i32
    %c0_i32_1 = arith.constant 0 : i32
    return %c0_i32, %c0_i32_0 : i32, i32
  }
  func.func @transform_5(%arg0: i32) -> (i32, i32, i32) {
    %c0_i32 = arith.constant 0 : i32
    %c0_i32_0 = arith.constant 0 : i32
    %c0_i32_1 = arith.constant 0 : i32
    return %arg0, %c0_i32, %c0_i32_0 : i32, i32, i32
  }
}

</mosaic_0001>

<bundles_post_ra>
// kernel: tpu_custom_call.1
= control target key start
LH: loop header
LB: loop body
LE: loop exit
PB: predicated region body
PF: predicated region fallthrough
CT: control target
= control target key end

     0   :  { %10 = vsyncpa [#allocation3], 0  ;;  %s755_s0 = inlined_call_operand.hbm [shape: f32[2,4,256], index: 0, kind: input, shape index: {}]   ;;  %s756_s1 = inlined_call_operand.vmem [shape: f32[4,2], index: 1, kind: input, shape index: {}]   ;;  %s757_s2 = inlined_call_operand.vmem [shape: f32[1,2], index: 2, kind: input, shape index: {}]   ;;  %s758_s3 = inlined_call_operand.vmem [shape: f32[4,2], index: 3, kind: input, shape index: {}]   ;;  %s759_s4 = inlined_call_operand.vmem [shape: f32[4,1], index: 4, kind: input, shape index: {}]   ;;  %s760_s5 = inlined_call_operand.hbm [shape: f32[2,4,256], index: 5, kind: output, shape index: {}]  }
   0x1   :  { %12 = vsyncpa [#allocation3 + $0x1], 0 }
   0x2   :  { %13 = vsyncpa [#allocation4], 0 }
   0x3   :  { %15 = vsyncpa [#allocation4 + $0x1], 0  ;;  %s608_s18 = smov 0   ;;  %s610_s19 = smov 0  }
   0x4   :  { %s612_s20 = smov 0   ;;  %s614_s21 = smov 0  }
   0x5 LB: > { %s629_s22 = sadd.s32 4294967295, %s573_s21   ;;  %s403_s23 = sadd.s32 4294967294, %s573_s21   ;;  %s573_s21 = sphi %s614_s21, %s770_s21   ;;  %s569_s20 = sphi %s612_s20, %s769_s20   ;;  %s565_s19 = sphi %s610_s19, %s768_s19   ;;  %s561_s18 = sphi %s608_s18, %s767_s18  }
   0x6   : > { %s633_s24 = sadd.s32 1, %s573_s21   ;;  %s28_s25 = sadd.s32 1, %s569_s20 }
   0x7   : > { %s25_s26 = ssub.s32 %s573_s21, %s633_s24  ;;  %p35_p0 = scmp.ne.s32.totalorder %s569_s20, %s565_s19 }
   0x8   : > { %p26_p1 = scmp.eq.s32.totalorder %s25_s26, 0  ;;  %p36_p2 = scmp.eq.s32.totalorder %s573_s21, 0 }
   0x9   : > { %p41_p3 = scmp.ne.s32.totalorder %s565_s19, %s561_s18  ;;  %p42_p4 = scmp.eq.s32.totalorder %s629_s22, 0 }
   0xa   : > { %s645_s27 = scalar_select %p26_p1, %s569_s20, %s28_s25  }
   0xb   : > { %p647_p5 = por %p36_p2, %p35_p0  ;;  %p651_p6 = por %p42_p4, %p41_p3 }
   0xc   : > { %p149_p7 = scmp.eq.s32.totalorder %s629_s22, 1  ;;  %p155_p8 = scmp.eq.s32.totalorder %s403_s23, 1 }
   0xd   : > { %p432_p10 = scmp.lt.s32.totalorder %s573_s21, 2  ;;  %s187_s7 = sand.u32 1, %s569_s20  }
   0xe   : > { %p658_p11 = por %p149_p7, %p35_p0  ;;  %p662_p12 = por %p155_p8, %p41_p3 }
   0xf   : > { %s418_s8 = sshll.u32 %s573_s21, 3  ;;  %s406_s9 = sshll.u32 %s187_s7, 3 }
  0x10   : > { %s196_s12 = scalar_lea.hbm %s755_s0, %s418_s8  ;;  %s191_s14 = scalar_lea.vmem [#allocation2], %s406_s9 }
  0x11   : > { %s198_s13 = sshll.u32 %s196_s12, 4  ;;  %s200_s15 = sshll.u32 %s191_s14, 4  ;;  %s199_s13 = int_to_ptr.hbm [resolvable:$true] %s198_s13  ;;  %s201_s15 = int_to_ptr.vmem [resolvable:$true] %s200_s15 }
  0x12   : > { %p673_p13 = pnand %p432_p10, %p647_p5  ;;  %p409_p0 = scmp.ge.s32.totalorder %s573_s21, 1 }
  0x13   : > { %p205_p1 = scmp.lt.s32.totalorder %s573_s21, 3  ;;  %s188_s17 = scalar_lea.sflag [#allocation3], %s187_s7 }
  0x14   : > { %s477_s23 = sshra.s32 %s199_s13, 4  ;;  %p481_p3 = pneg %p673_p13  ;;  %s478_s23 = int_to_ptr.hbm [resolvable:$true] %s477_s23 }
  0x15   : > { %s479_s25 = scalar_lea.hbm %s478_s23, 8  ;;  %s484_s28 = scalar_lea.hbm %s755_s0, 16 }
  0x16   : > { %p480_p2 = scmp.ne.s32.totalorder %s478_s23, %s479_s25  ;;  %p485_p5 = scmp.lt.s32.totalorder %s478_s23, %s755_s0 }
  0x17   : > { %p486_p8 = scmp.lt.s32.totalorder %s484_s28, %s479_s25 }
  0x18   : > { %p482_p4 = pnand %p481_p3, %p480_p2 }
  0x19   : > { %p487_p10 = por %p486_p8, %p485_p5 }
  0x1a   : > { %p483_p7 = pneg %p482_p4 }
  0x1c   : > { %p488_p9 = pnand %p487_p10, %p483_p7 }
  0x1e   : > { %491 = shalt.err (!%p488_p9)
}
  0x1f   : > { %427 = dma.hbm_to_vmem [thread:$0]  (!%p673_p13), %s199_s13, 128, %s201_s15, %s188_s17  }
  0x20   : > { %p206_p2 = pnand %p409_p0, %p205_p1 }
  0x21   : > { %s694_s7 = sand.u32 (!%p206_p2), 1, %s565_s19  }
  0x22   : > { %209 = sbr.rel (%p206_p2) target bundleno = 464 (0x1d0), region = 40  ;;  %s410_s11 = sshll.u32 (!%p206_p2), %s694_s7, 3 }
  0x23   : > { %s212_s12 = scalar_lea.sflag (!%p206_p2), [#allocation3], %s694_s7  ;;  %s215_s14 = scalar_lea.vmem (!%p206_p2), [#allocation2], %s410_s11 }
  0x27   : > { %552 = dma.done.wait (%p651_p6), %s212_s12, 128  }
  0x28   : > { %554 = vsyncadd (%p651_p6), %s212_s12, 4294967168  ;;  %v704_v0 = vld [vmem:[%s215_s14] sm:$0xff]  ;;  %vm250_vm0 = vcmask 1043456   ;;  %v575_v6 = vmov 256.0   ;;  %v264_v13 = vld [vmem:[%s756_s1] sm:$0xf] }
  0x29   : > { %245 = vst [vmem:[#allocation1] ss:$2 sm:$0xff] %v704_v0  ;;  %471 = vrcp.f32 %v575_v6  ;;  %vm266_vm2 = vcmask 11264   ;;  %v274_v23 = vld [vmem:[%s757_s2] sm:$0x1]  ;;  %v576_v31 = vmov 0  }
  0x2a   : > { %v277_v27 = vld [vmem:[%s758_s3] sm:$0xf]  ;;  %469 = vset.pattern.permute.xlu1 %v576_v31  ;;  %470 = vset.pattern.permute.xlu0 %v576_v31  ;;  %v577_v49 = vmov 839922192   ;;  %s419_s8 = sshll.u32 %s629_s22, 3  ;;  %s242_s12 = scalar_lea.vmem [#allocation5], %s410_s11 }
  0x2b   : > { %v283_v32 = vld [vmem:[%s759_s4] sm:$0xf]  ;;  %v310_v50 = vunpack.c.l.s4 %v577_v49  ;;  %s328_s10 = scalar_lea.hbm %s760_s5, %s419_s8  ;;  %s330_s14 = sshll.u32 %s242_s12, 4  ;;  %s331_s14 = int_to_ptr.vmem [resolvable:$true] %s330_s14 }
  0x2c   : > { %s332_s29 = sshll.u32 %s328_s10, 4  ;;  %s317_s13 = scalar_lea.sflag [#allocation4], %s694_s7  ;;  %s333_s29 = int_to_ptr.hbm [resolvable:$true] %s332_s29 }
  0x2d   : > { %v311_v51 = vunpack.c.0.s8 %v310_v50  ;;  %s521_s15 = sshra.s32 %s333_s29, 4  ;;  %s527_s11 = scalar_lea.hbm %s760_s5, 16  ;;  %s522_s15 = int_to_ptr.hbm [resolvable:$true] %s521_s15 }
  0x2e   : > { %s523_s22 = scalar_lea.hbm %s522_s15, 8  ;;  %p528_p0 = scmp.lt.s32.totalorder %s522_s15, %s760_s5 }
  0x2f   : > { %v472_v7 = vpop.eup %471  ;;  %p524_p6 = scmp.ne.s32.totalorder %s522_s15, %s523_s22  ;;  %p529_p1 = scmp.lt.s32.totalorder %s527_s11, %s523_s22 }
  0x30   : > { %v246_v1 = vld.sshfl [vmem:[#allocation1] sm:$0xff pattern:$0x75316420]  ;;  %v247_v2 = vld.sshfl [vmem:[#allocation1 + $0x8] sm:$0xff pattern:$0x75316420]  ;;  %vm261_vm1 = vweird.f32 %v472_v7 }
  0x31   : > { %v251_v3 = vsel %vm250_vm0, %v246_v1, 0.0  ;;  %v252_v4 = vsel %vm250_vm0, %v247_v2, 0.0  ;;  %v257_v8 = vmul.f32 256.0, %v472_v7  ;;  %p525_p9 = pnand %p524_p6, %p658_p11  ;;  %p530_p3 = por %p529_p1, %p528_p0 }
  0x32   : > { %v253_v5 = vadd.f32 %v252_v4, %v251_v3 }
  0x33   : > { %v258_v9 = vsub.f32 1.0, %v257_v8  ;;  %p526_p13 = pneg %p525_p9 }
  0x34   : > { %254 = vadd.xlane.f32.xlu0 %v253_v5 }
  0x35   : > { %v259_v10 = vmul.f32 %v472_v7, %v258_v9  ;;  %p531_p4 = pnand %p530_p3, %p526_p13 }
  0x37   : > { %v260_v11 = vadd.f32 %v472_v7, %v259_v10 }
  0x39   : > { %v262_v12 = vsel %vm261_vm1, %v472_v7, %v260_v11 }
  0xa7   : > { %v255_v14 = vpop.xlane.xlu0 %254 }
  0xa8   : > { %v263_v15 = vmul.f32 %v262_v12, %v255_v14 }
  0xaa   : > { %v265_v16 = vmul.f32 %v264_v13, %v263_v15 }
  0xac   : > { %v267_v17 = vsel %vm266_vm2, %v265_v16, 0.0 }
  0xad   : > { %v268_v18 = vrot.slane %v267_v17, 4 }
  0xaf   : > { %v269_v19 = vadd.f32 %v268_v18, %v267_v17 }
  0xb1   : > { %v270_v20 = vrot.slane %v269_v19, 2 }
  0xb3   : > { %v271_v21 = vadd.f32 %v270_v20, %v269_v19 }
  0xb5   : > { %v272_v22 = vrot.slane %v271_v21, 1 }
  0xb7   : > { %v273_v24 = vadd.f32 %v272_v22, %v271_v21 }
  0xb9   : > { %v275_v25 = vadd.f32 %v274_v23, %v273_v24 }
  0xbb   : > { %v276_v26 = vmax.f32 %v275_v25, 0.0 }
  0xbd   : > { %v278_v28 = vperm.slane %v276_v26, 0 }
  0xbf   : > { %v279_v29 = vmul.f32 %v278_v28, %v277_v27 }
  0xc1   : > { %v280_v30 = vsel %vm266_vm2, %v279_v29, 0.0 }
  0xc2   : > { %281 = vadd.xlane.f32.xlu0 %v280_v30 }
 0x135   : > { %v282_v33 = vpop.xlane.xlu0 %281 }
 0x136   : > { %v284_v34 = vadd.f32 %v283_v32, %v282_v33 }
 0x138   : > { %v285_v35 = vmax.f32 %v284_v34, 0.0 }
 0x13a   : > { %v412_v36 = vmul.f32 -1.442695, %v285_v35 }
 0x13c   : > { %473 = vpow2.f32 %v412_v36 }
 0x142   : > { %v474_v37 = vpop.eup %473 }
 0x143   : > { %v289_v38 = vadd.f32 1.0, %v474_v37 }
 0x145   : > { %475 = vrcp.f32 %v289_v38  ;;  %v301_v42 = vand.u32 2147483648, %v289_v38  ;;  %v299_v44 = vand.u32 2147483647, %v289_v38  ;;  %vm295_vm4 = vweird.f32 %v289_v38 }
 0x147   : > { %v302_v46 = vor.u32 1.1754944e-38, %v301_v42  ;;  %vm300_vm6 = vcmp.eq.f32.partialorder %v299_v44, 8.507059e+37 }
 0x14b   : > { %v476_v39 = vpop.eup %475 }
 0x14c   : > { %v291_v40 = vmul.f32 %v476_v39, %v289_v38  ;;  %vm296_vm3 = vweird.f32 %v476_v39 }
 0x14d   : > { %vm297_vm5 = vmor %vm295_vm4, %vm296_vm3 }
 0x14e   : > { %v292_v41 = vsub.f32 1.0, %v291_v40 }
 0x150   : > { %v293_v43 = vmul.f32 %v476_v39, %v292_v41 }
 0x152   : > { %v294_v45 = vadd.f32 %v476_v39, %v293_v43 }
 0x154   : > { %v298_v47 = vsel %vm297_vm5, %v476_v39, %v294_v45 }
 0x155   : > { %v303_v48 = vsel %vm300_vm6, %v302_v46, %v298_v47 }
 0x156   : > { %307 = vperm.xlu1 %469, %v303_v48  }
 0x1c8   : > { %v308_v52 = vpop.permute.xlu1 %307 }
 0x1c9   : > { %v312_v53 = vperm.slane %v308_v52, %v311_v51 }
 0x1cb   : > { %v314_v54 = vmul.f32 %v312_v53, %v704_v0 }
 0x1cd   : > { %315 = vst [vmem:[%s242_s12] sm:$0xff] %v314_v54 }
 0x1ce   : > { %534 = shalt.err (!%p531_p4)
}
 0x1cf   : > { %422 = dma.vmem_to_hbm [thread:$0]  (%p658_p11), %s331_s14, 128, %s333_s29, %s317_s13  }
 0x1d0 PF: > { %s344_s7 = sand.u32 1, %s561_s18   ;;  %p766_p7 = scmp.ge.s32.totalorder %s573_s21, 2 }
 0x1d1   : > { %s345_s26 = scalar_lea.sflag [#allocation4], %s344_s7 }
 0x1d2   : > { %p429_p5 = pnand %p766_p7, %p662_p12 }
 0x1d4   : > { %p430_p8 = pneg %p429_p5 }
 0x1d6   : > { %556 = dma.done.wait (%p430_p8), %s345_s26, 128  }
 0x1d7   : > { %558 = vsyncadd (%p430_p8), %s345_s26, 4294967168  ;;  %p18_p10 = scmp.ge.s32.totalorder %s633_s24, 4   ;;  %s767_s18 = smov %s565_s19 }
 0x1d8   : > { %s768_s19 = smov %s569_s20  ;;  %s769_s20 = smov %s645_s27 }
 0x1d9   : > { %s770_s21 = smov %s633_s24  ;;  %20 = sbr.rel (!%p18_p10) target bundleno = 5 (0x5), region = 85 }
 0x1de   :  { %351 = vsyncpa [#allocation3], 1 }
 0x1df   :  { %353 = vsyncpa [#allocation3 + $0x1], 1 }
 0x1e0   :  { %354 = vsyncpa [#allocation4], 1 }
 0x1e1   :  { %356 = vsyncpa [#allocation4 + $0x1], 1 }

</bundles_post_ra>
